<compile_context>
chip_gen: v6e
topology: v6e:2x2x1
jax: 0.10.0
libtpu: 0.0.40
codegen_flags: <defaults>
</compile_context>

<pallas_src>
import jax
import jax.numpy as jnp
import numpy as np
from jax.experimental import pallas as pl
from jax.experimental.pallas import tpu as pltpu


def _student_mlp_kernel(embeds_ref, mask_ref,
                        w1_ref, b1_ref,
                        w2_ref, b2_ref,
                        w3_ref, b3_ref,
                        gamma_ref, beta_ref,
                        out_ref):
    # ---- Masked mean pooling over the sequence axis (f32 elementwise) ----
    emb = embeds_ref[...].astype(jnp.float32)            # (TB, S, E)
    m = mask_ref[...]                                     # (TB, S) f32
    sum_emb = jnp.sum(emb * m[:, :, None], axis=1)        # (TB, E)
    sum_mask = jnp.sum(m, axis=1, keepdims=True)          # (TB, 1)
    avg = sum_emb / (sum_mask + 1e-10)                    # (TB, E)

    # ---- fc1 + ReLU (dropout1 identity): bf16 MXU inputs, f32 accumulate ----
    h1 = jnp.dot(avg.astype(jnp.bfloat16), w1_ref[...],
                 preferred_element_type=jnp.float32) + b1_ref[...]
    h1 = jnp.maximum(h1, 0.0)

    # ---- fc2 + ReLU (dropout2 identity) ----
    h2 = jnp.dot(h1.astype(jnp.bfloat16), w2_ref[...],
                 preferred_element_type=jnp.float32) + b2_ref[...]
    h2 = jnp.maximum(h2, 0.0)

    # ---- fc3 ----
    h3 = jnp.dot(h2.astype(jnp.bfloat16), w3_ref[...],
                 preferred_element_type=jnp.float32) + b3_ref[...]

    # ---- LayerNorm (eps=1e-5, biased variance); reuse centered tensor ----
    mu = jnp.mean(h3, axis=-1, keepdims=True)
    centered = h3 - mu
    var = jnp.mean(centered * centered, axis=-1, keepdims=True)
    out_ref[...] = (centered * jax.lax.rsqrt(var + 1e-5)) * gamma_ref[...] + beta_ref[...]


def _round_up(x, m):
    return ((x + m - 1) // m) * m


def _choose_batch_tile(batch, seq, emb_dim):
    # Keep the double-buffered bf16 embeds stream <= ~16 MiB so the block fits
    # comfortably in v7x's 64 MiB VMEM alongside resident weights and output
    # double-buffers; cap at 256 rows (MXU-sized M on v6e/v7x), floor 8.
    budget = 16 * 1024 * 1024
    bytes_per_row = 2 * seq * emb_dim                     # bf16 bytes / batch row
    tb = budget // max(1, 2 * bytes_per_row)
    tb = max(8, min(256, (tb // 8) * 8))
    tb = min(tb, _round_up(batch, 8))
    return tb


def init_params(key, vocab_size, embedding_dim=128, hidden_dim=256, output_dim=768):
    """Deterministic parameter init mirroring the PyTorch module's shapes."""
    k_emb, k1, k2, k3, kb1, kb2, kb3 = jax.random.split(key, 7)

    def linear_init(kw, kb, fan_in, fan_out):
        bound = 1.0 / jnp.sqrt(fan_in)
        w = jax.random.uniform(kw, (fan_in, fan_out), jnp.float32, -bound, bound)
        b = jax.random.uniform(kb, (fan_out,), jnp.float32, -bound, bound)
        return w, b

    w1, b1 = linear_init(k1, kb1, embedding_dim, hidden_dim)
    w2, b2 = linear_init(k2, kb2, hidden_dim, hidden_dim)
    w3, b3 = linear_init(k3, kb3, hidden_dim, output_dim)
    return {
        "embedding": jax.random.normal(k_emb, (vocab_size, embedding_dim), jnp.float32),
        "w1": w1, "b1": b1,
        "w2": w2, "b2": b2,
        "w3": w3, "b3": b3,
        "gamma": jnp.ones((output_dim,), jnp.float32),
        "beta": jnp.zeros((output_dim,), jnp.float32),
    }


@jax.jit
def bert_student_mlp_forward(input_ids, attention_mask, params):
    B, S = input_ids.shape
    E = params["embedding"].shape[1]
    H = params["w1"].shape[1]
    O = params["w3"].shape[1]

    # Glue: embedding-table gather (nn.Embedding), streamed to the kernel in bf16.
    # TODO(synk): fuse the gather into the kernel (scalar-prefetched ids + manual
    # HBM DMA) so (B,S,E) is never materialized in HBM.
    embeds = jnp.take(params["embedding"], input_ids, axis=0).astype(jnp.bfloat16)
    mask = attention_mask.astype(jnp.float32)

    tb = _choose_batch_tile(B, S, E)
    b_pad = _round_up(B, tb)
    if b_pad != B:
        embeds = jnp.pad(embeds, ((0, b_pad - B), (0, 0), (0, 0)))
        mask = jnp.pad(mask, ((0, b_pad - B), (0, 0)))

    w1 = params["w1"].astype(jnp.bfloat16)
    w2 = params["w2"].astype(jnp.bfloat16)
    w3 = params["w3"].astype(jnp.bfloat16)
    b1 = params["b1"].reshape(1, H)
    b2 = params["b2"].reshape(1, H)
    b3 = params["b3"].reshape(1, O)
    gamma = params["gamma"].reshape(1, O)
    beta = params["beta"].reshape(1, O)

    const2 = lambda i: (0, 0)   # weights/biases: same block every grid step

    out = pl.pallas_call(
        _student_mlp_kernel,
        out_shape=jax.ShapeDtypeStruct((b_pad, O), jnp.float32),
        grid=(b_pad // tb,),
        in_specs=[
            pl.BlockSpec((tb, S, E), lambda i: (i, 0, 0)),   # embeds stream
            pl.BlockSpec((tb, S), lambda i: (i, 0)),          # attention mask
            pl.BlockSpec((E, H), const2),                     # w1
            pl.BlockSpec((1, H), const2),                     # b1
            pl.BlockSpec((H, H), const2),                     # w2
            pl.BlockSpec((1, H), const2),                     # b2
            pl.BlockSpec((H, O), const2),                     # w3
            pl.BlockSpec((1, O), const2),                     # b3
            pl.BlockSpec((1, O), const2),                     # gamma
            pl.BlockSpec((1, O), const2),                     # beta
        ],
        out_specs=pl.BlockSpec((tb, O), lambda i: (i, 0)),
        compiler_params=pltpu.CompilerParams(
            dimension_semantics=("parallel",),
            vmem_limit_bytes=48 * 1024 * 1024,
        ),
    )(embeds, mask, w1, b1, w2, b2, w3, b3, gamma, beta)

    return out[:B]


def _reference_forward(input_ids, attention_mask, params):
    """Pure-JAX f32 reference matching the PyTorch module (eval mode)."""
    embeds = jnp.take(params["embedding"], input_ids, axis=0)
    mask = attention_mask.astype(jnp.float32)
    summed = jnp.sum(embeds * mask[:, :, None], axis=1)
    avg = summed / (jnp.sum(mask, axis=1, keepdims=True) + 1e-10)
    h1 = jnp.maximum(avg @ params["w1"] + params["b1"], 0.0)
    h2 = jnp.maximum(h1 @ params["w2"] + params["b2"], 0.0)
    h3 = h2 @ params["w3"] + params["b3"]
    mu = jnp.mean(h3, axis=-1, keepdims=True)
    var = jnp.mean((h3 - mu) ** 2, axis=-1, keepdims=True)
    return (h3 - mu) * jax.lax.rsqrt(var + 1e-5) * params["gamma"] + params["beta"]


if __name__ == "__main__":
    # Small, module-consistent shapes: batch=2, seq=8, default feature dims.
    vocab_size = 1000
    batch, seq = 2, 8
    embedding_dim, hidden_dim, output_dim = 128, 256, 768

    key = jax.random.PRNGKey(0)
    k_params, k_ids = jax.random.split(key)

    params = init_params(k_params, vocab_size, embedding_dim, hidden_dim, output_dim)

    input_ids = jax.random.randint(k_ids, (batch, seq), 0, vocab_size, dtype=jnp.int32)
    # First example fully attended, second example has padding at the end.
    attention_mask = jnp.array(
        [[1, 1, 1, 1, 1, 1, 1, 1],
         [1, 1, 1, 1, 1, 0, 0, 0]], dtype=jnp.int32)

    out = bert_student_mlp_forward(input_ids, attention_mask, params)
    jax.block_until_ready(out)

    assert out.shape == (batch, output_dim), out.shape
    assert out.dtype == jnp.float32
    assert bool(jnp.all(jnp.isfinite(out)))

    ref = _reference_forward(input_ids, attention_mask, params)
    # bf16 matmul inputs vs f32 reference -> generous tolerance.
    assert np.allclose(np.asarray(out), np.asarray(ref), atol=1e-1, rtol=1e-1), (
        float(jnp.max(jnp.abs(out - ref))))

    print("KERNEL_OK")
</pallas_src>

<mosaic_0001>
module attributes {stable_mosaic.version = 11 : i64} {
  func.func @_student_mlp_kernel(%arg0: i32, %arg1: memref<8x8x128xbf16, #tpu.memory_space<vmem>>, %arg2: memref<8x8xf32, #tpu.memory_space<vmem>>, %arg3: memref<128x256xbf16, #tpu.memory_space<vmem>>, %arg4: memref<1x256xf32, #tpu.memory_space<vmem>>, %arg5: memref<256x256xbf16, #tpu.memory_space<vmem>>, %arg6: memref<1x256xf32, #tpu.memory_space<vmem>>, %arg7: memref<256x768xbf16, #tpu.memory_space<vmem>>, %arg8: memref<1x768xf32, #tpu.memory_space<vmem>>, %arg9: memref<1x768xf32, #tpu.memory_space<vmem>>, %arg10: memref<1x768xf32, #tpu.memory_space<vmem>>, %arg11: memref<8x768xf32, #tpu.memory_space<vmem>>) attributes {dimension_semantics = [#tpu.dimension_semantics<parallel>], iteration_bounds = array<i64: 1>, scalar_prefetch = 0 : i64, scratch_operands = 0 : i64, tpu.core_type = #tpu.core_type<tc>, window_params = [{transform_indices = @transform_0, window_bounds = array<i64: 8, 8, 128>}, {transform_indices = @transform_1, window_bounds = array<i64: 8, 8>}, {pipeline_mode = #tpu.pipeline_mode<synchronous>, transform_indices = @transform_2, window_bounds = array<i64: 128, 256>}, {pipeline_mode = #tpu.pipeline_mode<synchronous>, transform_indices = @transform_3, window_bounds = array<i64: 1, 256>}, {pipeline_mode = #tpu.pipeline_mode<synchronous>, transform_indices = @transform_4, window_bounds = array<i64: 256, 256>}, {pipeline_mode = #tpu.pipeline_mode<synchronous>, transform_indices = @transform_5, window_bounds = array<i64: 1, 256>}, {pipeline_mode = #tpu.pipeline_mode<synchronous>, transform_indices = @transform_6, window_bounds = array<i64: 256, 768>}, {pipeline_mode = #tpu.pipeline_mode<synchronous>, transform_indices = @transform_7, window_bounds = array<i64: 1, 768>}, {pipeline_mode = #tpu.pipeline_mode<synchronous>, transform_indices = @transform_8, window_bounds = array<i64: 1, 768>}, {pipeline_mode = #tpu.pipeline_mode<synchronous>, transform_indices = @transform_9, window_bounds = array<i64: 1, 768>}, {transform_indices = @transform_10, window_bounds = array<i64: 8, 768>}]} {
    %c0 = arith.constant 0 : index
    %c0_0 = arith.constant 0 : index
    %c0_1 = arith.constant 0 : index
    %0 = vector.load %arg1[%c0, %c0_0, %c0_1] : memref<8x8x128xbf16, #tpu.memory_space<vmem>>, vector<8x8x128xbf16>
    %1 = arith.extf %0 : vector<8x8x128xbf16> to vector<8x8x128xf32>
    %c0_2 = arith.constant 0 : index
    %c0_3 = arith.constant 0 : index
    %2 = vector.load %arg2[%c0_2, %c0_3] : memref<8x8xf32, #tpu.memory_space<vmem>>, vector<8x8xf32>
    %3 = vector.shape_cast %2 : vector<8x8xf32> to vector<8x8x1xf32>
    %4 = vector.broadcast %3 : vector<8x8x1xf32> to vector<8x8x128xf32>
    %5 = arith.mulf %1, %4 : vector<8x8x128xf32>
    %cst = arith.constant dense<0.000000e+00> : vector<8x128xf32>
    %6 = vector.multi_reduction <add>, %5, %cst [1] : vector<8x8x128xf32> to vector<8x128xf32>
    %cst_4 = arith.constant dense<0.000000e+00> : vector<8xf32>
    %7 = vector.multi_reduction <add>, %2, %cst_4 [1] : vector<8x8xf32> to vector<8xf32>
    %8 = vector.shape_cast %7 : vector<8xf32> to vector<8x1xf32>
    %cst_5 = arith.constant 1.000000e-10 : f32
    %9 = vector.broadcast %cst_5 : f32 to vector<8x1xf32>
    %10 = arith.addf %8, %9 : vector<8x1xf32>
    %11 = vector.broadcast %10 : vector<8x1xf32> to vector<8x128xf32>
    %12 = arith.divf %6, %11 : vector<8x128xf32>
    %13 = arith.truncf %12 : vector<8x128xf32> to vector<8x128xbf16>
    %c0_6 = arith.constant 0 : index
    %c0_7 = arith.constant 0 : index
    %14 = vector.load %arg3[%c0_6, %c0_7] : memref<128x256xbf16, #tpu.memory_space<vmem>>, vector<128x256xbf16>
    %cst_8 = arith.constant dense<0.000000e+00> : vector<8x256xf32>
    %15 = tpu.matmul %13, %14, %cst_8 {dimension_numbers = #tpu.dot_dimension_numbers<[1], [0], [0], [1], [0, 0, 1, 1], [], []>} : vector<8x128xbf16>, vector<128x256xbf16>, vector<8x256xf32> -> vector<8x256xf32>
    %c0_9 = arith.constant 0 : index
    %c0_10 = arith.constant 0 : index
    %16 = vector.load %arg4[%c0_9, %c0_10] : memref<1x256xf32, #tpu.memory_space<vmem>>, vector<1x256xf32>
    %17 = vector.broadcast %16 : vector<1x256xf32> to vector<8x256xf32>
    %18 = arith.addf %15, %17 : vector<8x256xf32>
    %cst_11 = arith.constant 0.000000e+00 : f32
    %19 = vector.broadcast %cst_11 : f32 to vector<8x256xf32>
    %20 = arith.maximumf %18, %19 : vector<8x256xf32>
    %21 = arith.truncf %20 : vector<8x256xf32> to vector<8x256xbf16>
    %c0_12 = arith.constant 0 : index
    %c0_13 = arith.constant 0 : index
    %22 = vector.load %arg5[%c0_12, %c0_13] : memref<256x256xbf16, #tpu.memory_space<vmem>>, vector<256x256xbf16>
    %cst_14 = arith.constant dense<0.000000e+00> : vector<8x256xf32>
    %23 = tpu.matmul %21, %22, %cst_14 {dimension_numbers = #tpu.dot_dimension_numbers<[1], [0], [0], [1], [0, 0, 1, 1], [], []>} : vector<8x256xbf16>, vector<256x256xbf16>, vector<8x256xf32> -> vector<8x256xf32>
    %c0_15 = arith.constant 0 : index
    %c0_16 = arith.constant 0 : index
    %24 = vector.load %arg6[%c0_15, %c0_16] : memref<1x256xf32, #tpu.memory_space<vmem>>, vector<1x256xf32>
    %25 = vector.broadcast %24 : vector<1x256xf32> to vector<8x256xf32>
    %26 = arith.addf %23, %25 : vector<8x256xf32>
    %cst_17 = arith.constant 0.000000e+00 : f32
    %27 = vector.broadcast %cst_17 : f32 to vector<8x256xf32>
    %28 = arith.maximumf %26, %27 : vector<8x256xf32>
    %29 = arith.truncf %28 : vector<8x256xf32> to vector<8x256xbf16>
    %c0_18 = arith.constant 0 : index
    %c0_19 = arith.constant 0 : index
    %30 = vector.load %arg7[%c0_18, %c0_19] : memref<256x768xbf16, #tpu.memory_space<vmem>>, vector<256x768xbf16>
    %cst_20 = arith.constant dense<0.000000e+00> : vector<8x768xf32>
    %31 = tpu.matmul %29, %30, %cst_20 {dimension_numbers = #tpu.dot_dimension_numbers<[1], [0], [0], [1], [0, 0, 1, 1], [], []>} : vector<8x256xbf16>, vector<256x768xbf16>, vector<8x768xf32> -> vector<8x768xf32>
    %c0_21 = arith.constant 0 : index
    %c0_22 = arith.constant 0 : index
    %32 = vector.load %arg8[%c0_21, %c0_22] : memref<1x768xf32, #tpu.memory_space<vmem>>, vector<1x768xf32>
    %33 = vector.broadcast %32 : vector<1x768xf32> to vector<8x768xf32>
    %34 = arith.addf %31, %33 : vector<8x768xf32>
    %cst_23 = arith.constant dense<0.000000e+00> : vector<8xf32>
    %35 = vector.multi_reduction <add>, %34, %cst_23 [1] : vector<8x768xf32> to vector<8xf32>
    %36 = vector.shape_cast %35 : vector<8xf32> to vector<8x1xf32>
    %cst_24 = arith.constant 7.680000e+02 : f32
    %37 = vector.broadcast %cst_24 : f32 to vector<8x1xf32>
    %38 = arith.divf %36, %37 : vector<8x1xf32>
    %39 = vector.broadcast %38 : vector<8x1xf32> to vector<8x768xf32>
    %40 = arith.subf %34, %39 : vector<8x768xf32>
    %41 = arith.mulf %40, %40 : vector<8x768xf32>
    %cst_25 = arith.constant dense<0.000000e+00> : vector<8xf32>
    %42 = vector.multi_reduction <add>, %41, %cst_25 [1] : vector<8x768xf32> to vector<8xf32>
    %43 = vector.shape_cast %42 : vector<8xf32> to vector<8x1xf32>
    %cst_26 = arith.constant 7.680000e+02 : f32
    %44 = vector.broadcast %cst_26 : f32 to vector<8x1xf32>
    %45 = arith.divf %43, %44 : vector<8x1xf32>
    %cst_27 = arith.constant 9.99999974E-6 : f32
    %46 = vector.broadcast %cst_27 : f32 to vector<8x1xf32>
    %47 = arith.addf %45, %46 : vector<8x1xf32>
    %48 = math.rsqrt %47 : vector<8x1xf32>
    %49 = vector.broadcast %48 : vector<8x1xf32> to vector<8x768xf32>
    %50 = arith.mulf %40, %49 : vector<8x768xf32>
    %c0_28 = arith.constant 0 : index
    %c0_29 = arith.constant 0 : index
    %51 = vector.load %arg9[%c0_28, %c0_29] : memref<1x768xf32, #tpu.memory_space<vmem>>, vector<1x768xf32>
    %52 = vector.broadcast %51 : vector<1x768xf32> to vector<8x768xf32>
    %53 = arith.mulf %50, %52 : vector<8x768xf32>
    %c0_30 = arith.constant 0 : index
    %c0_31 = arith.constant 0 : index
    %54 = vector.load %arg10[%c0_30, %c0_31] : memref<1x768xf32, #tpu.memory_space<vmem>>, vector<1x768xf32>
    %55 = vector.broadcast %54 : vector<1x768xf32> to vector<8x768xf32>
    %56 = arith.addf %53, %55 : vector<8x768xf32>
    %c0_32 = arith.constant 0 : index
    %c0_33 = arith.constant 0 : index
    %57 = vector.load %arg11[%c0_32, %c0_33] : memref<8x768xf32, #tpu.memory_space<vmem>>, vector<8x768xf32>
    tpu.vector_store %arg11[%c0_32, %c0_33], %56 {strides = array<i32>} : memref<8x768xf32, #tpu.memory_space<vmem>>, vector<8x768xf32>,
    return
  }
  func.func @transform_0(%arg0: i32) -> (i32, i32, i32) {
    %c0_i32 = arith.constant 0 : i32
    %c0_i32_0 = arith.constant 0 : i32
    %c0_i32_1 = arith.constant 0 : i32
    return %arg0, %c0_i32, %c0_i32_0 : i32, i32, i32
  }
  func.func @transform_1(%arg0: i32) -> (i32, i32) {
    %c0_i32 = arith.constant 0 : i32
    %c0_i32_0 = arith.constant 0 : i32
    return %arg0, %c0_i32 : i32, i32
  }
  func.func @transform_2(%arg0: i32) -> (i32, i32) {
    %c0_i32 = arith.constant 0 : i32
    %c0_i32_0 = arith.constant 0 : i32
    %c0_i32_1 = arith.constant 0 : i32
    return %c0_i32, %c0_i32_0 : i32, i32
  }
  func.func @transform_3(%arg0: i32) -> (i32, i32) {
    %c0_i32 = arith.constant 0 : i32
    %c0_i32_0 = arith.constant 0 : i32
    %c0_i32_1 = arith.constant 0 : i32
    return %c0_i32, %c0_i32_0 : i32, i32
  }
  func.func @transform_4(%arg0: i32) -> (i32, i32) {
    %c0_i32 = arith.constant 0 : i32
    %c0_i32_0 = arith.constant 0 : i32
    %c0_i32_1 = arith.constant 0 : i32
    return %c0_i32, %c0_i32_0 : i32, i32
  }
  func.func @transform_5(%arg0: i32) -> (i32, i32) {
    %c0_i32 = arith.constant 0 : i32
    %c0_i32_0 = arith.constant 0 : i32
    %c0_i32_1 = arith.constant 0 : i32
    return %c0_i32, %c0_i32_0 : i32, i32
  }
  func.func @transform_6(%arg0: i32) -> (i32, i32) {
    %c0_i32 = arith.constant 0 : i32
    %c0_i32_0 = arith.constant 0 : i32
    %c0_i32_1 = arith.constant 0 : i32
    return %c0_i32, %c0_i32_0 : i32, i32
  }
  func.func @transform_7(%arg0: i32) -> (i32, i32) {
    %c0_i32 = arith.constant 0 : i32
    %c0_i32_0 = arith.constant 0 : i32
    %c0_i32_1 = arith.constant 0 : i32
    return %c0_i32, %c0_i32_0 : i32, i32
  }
  func.func @transform_8(%arg0: i32) -> (i32, i32) {
    %c0_i32 = arith.constant 0 : i32
    %c0_i32_0 = arith.constant 0 : i32
    %c0_i32_1 = arith.constant 0 : i32
    return %c0_i32, %c0_i32_0 : i32, i32
  }
  func.func @transform_9(%arg0: i32) -> (i32, i32) {
    %c0_i32 = arith.constant 0 : i32
    %c0_i32_0 = arith.constant 0 : i32
    %c0_i32_1 = arith.constant 0 : i32
    return %c0_i32, %c0_i32_0 : i32, i32
  }
  func.func @transform_10(%arg0: i32) -> (i32, i32) {
    %c0_i32 = arith.constant 0 : i32
    %c0_i32_0 = arith.constant 0 : i32
    return %arg0, %c0_i32 : i32, i32
  }
}

</mosaic_0001>

<bundles_post_ra>
// kernel: bert_student_mlp_forward.1
= control target key start
LH: loop header
LB: loop body
LE: loop exit
PB: predicated region body
PF: predicated region fallthrough
CT: control target
= control target key end

     0   :  { %vm165_vm0 = vcmask 64512   ;;  %v53_v0 = vlaneseq  ;;  %v1903_v35 = vmov 0   ;;  %vm255_vm1 = vcmask 1041409   ;;  %s2484_s1 = inlined_call_operand.vmem [shape: f32[8,8], index: 1, kind: input, shape index: {}]   ;;  %s2485_s2 = inlined_call_operand.vmem [shape: bf16[128,256], index: 2, kind: input, shape index: {}]   ;;  %s2486_s4 = inlined_call_operand.vmem [shape: bf16[256,256], index: 4, kind: input, shape index: {}]   ;;  %s2487_s0 = inlined_call_operand.vmem [shape: bf16[8,8,128], index: 0, kind: input, shape index: {}]   ;;  %s2488_s6 = inlined_call_operand.vmem [shape: bf16[256,768], index: 6, kind: input, shape index: {}]   ;;  %s2489_s3 = inlined_call_operand.vmem [shape: f32[1,256], index: 3, kind: input, shape index: {}]   ;;  %s2490_s5 = inlined_call_operand.vmem [shape: f32[1,256], index: 5, kind: input, shape index: {}]   ;;  %s2491_s7 = inlined_call_operand.vmem [shape: f32[1,768], index: 7, kind: input, shape index: {}]   ;;  %s2492_s8 = inlined_call_operand.vmem [shape: f32[1,768], index: 8, kind: input, shape index: {}]   ;;  %s2493_s9 = inlined_call_operand.vmem [shape: f32[1,768], index: 9, kind: input, shape index: {}]   ;;  %s2494_s10 = inlined_call_operand.vmem [shape: f32[8,768], index: 10, kind: output, shape index: {}]  }
   0x1   :  { %v52_v1 = vld [vmem:[%s2484_s1] sm:$0xff]  ;;  %v1669_v13 = vld [vmem:[%s2485_s2 + $0x74] ss:$8 sps:$4 sm:$0xff]   ;;  %v1671_v15 = vld [vmem:[%s2485_s2 + $0x70] ss:$8 sps:$4 sm:$0xff]   ;;  %389 = vmatprep.mubr.bf16.mxu0 %v1903_v35  ;;  %vm258_vm2 = vcmask 1042434  }
   0x2   :  { %v166_v2 = vsel %vm165_vm0, %v52_v1, 0.0  ;;  %v54_v3 = vshrl.u32 %v53_v0, 7  ;;  %357 = vmatprep.subr.bf16.mxu0 %v1669_v13  ;;  %v1672_v19 = vld [vmem:[%s2485_s2 + $0x64] ss:$8 sps:$4 sm:$0xff]   ;;  %v1674_v20 = vld [vmem:[%s2485_s2 + $0x60] ss:$8 sps:$4 sm:$0xff]  }
   0x3   :  { %167 = vadd.xlane.f32.xlu0 %v166_v2  ;;  %358 = vmatpush1.bf16.msra.mxu0 %v1671_v15  ;;  %v1675_v23 = vld [vmem:[%s2485_s2 + $0x54] ss:$8 sps:$4 sm:$0xff]   ;;  %v1677_v24 = vld [vmem:[%s2485_s2 + $0x50] ss:$8 sps:$4 sm:$0xff]   ;;  %v1678_v26 = vld [vmem:[%s2485_s2 + $0x44] ss:$8 sps:$4 sm:$0xff]  }
   0x4   :  { %v1962_v4 = vsub.s32 2, %v54_v3  ;;  %v1964_v5 = vsub.s32 0, %v54_v3  ;;  %v1968_v8 = vsub.s32 3, %v54_v3  ;;  %v1971_v10 = vsub.s32 4, %v54_v3  ;;  %359 = vmatprep.subr.bf16.mxu0 %v1672_v19  ;;  %v1680_v27 = vld [vmem:[%s2485_s2 + $0x40] ss:$8 sps:$4 sm:$0xff]  }
   0x5   :  { %v1974_v12 = vsub.s32 5, %v54_v3  ;;  %v1979_v14 = vsub.s32 1, %v54_v3  ;;  %v97_v17 = vsub.s32 6, %v54_v3  ;;  %v104_v22 = vsub.s32 7, %v54_v3  ;;  %v1681_v28 = vld [vmem:[%s2485_s2 + $0x34] ss:$8 sps:$4 sm:$0xff]  }
   0x6   :  { %v70_v6 = vrot.slane %v52_v1, %v1962_v4  ;;  %v56_v7 = vrot.slane %v52_v1, %v1964_v5  ;;  %v77_v9 = vrot.slane %v52_v1, %v1968_v8  ;;  %v84_v11 = vrot.slane %v52_v1, %v1971_v10  ;;  %v1683_v29 = vld [vmem:[%s2485_s2 + $0x30] ss:$8 sps:$4 sm:$0xff]   ;;  %v1684_v30 = vld [vmem:[%s2485_s2 + $0x24] ss:$8 sps:$4 sm:$0xff]   ;;  %v1686_v31 = vld [vmem:[%s2485_s2 + $0x20] ss:$8 sps:$4 sm:$0xff]  }
   0x7   :  { %v91_v16 = vrot.slane %v52_v1, %v1974_v12  ;;  %v63_v18 = vrot.slane %v52_v1, %v1979_v14  ;;  %v98_v21 = vrot.slane %v52_v1, %v97_v17  ;;  %360 = vmatpush1.bf16.msra.mxu0 %v1674_v20  ;;  %v105_v25 = vrot.slane %v52_v1, %v104_v22  ;;  %v1687_v32 = vld [vmem:[%s2485_s2 + $0x14] ss:$8 sps:$4 sm:$0xff]   ;;  %v1689_v33 = vld [vmem:[%s2485_s2 + $0x10] ss:$8 sps:$4 sm:$0xff]   ;;  %v1690_v34 = vld [vmem:[%s2485_s2 + $0x4] ss:$8 sps:$4 sm:$0xff]  }
   0x8   :  { %72 = vbcast.lane.b32.xlu1 %v70_v6, 256  ;;  %361 = vmatprep.subr.bf16.mxu0 %v1675_v23  ;;  %v1692_v36 = vld [vmem:[%s2485_s2] ss:$8 sps:$4 sm:$0xff]   ;;  %v1693_v37 = vld [vmem:[%s2486_s4 + $0x74] ss:$8 sps:$4 sm:$0xff]   ;;  %vm261_vm3 = vcmask 1043459  }
   0x9   :  { %v1695_v38 = vld [vmem:[%s2486_s4 + $0x70] ss:$8 sps:$4 sm:$0xff]   ;;  %606 = vmatprep.subr.bf16.mxu1 %v1693_v37  ;;  %v1696_v39 = vld [vmem:[%s2486_s4 + $0x64] ss:$8 sps:$4 sm:$0xff]   ;;  %v1698_v40 = vld [vmem:[%s2486_s4 + $0x60] ss:$8 sps:$4 sm:$0xff]  }
   0xa   :  { %607 = vmatpush1.bf16.msra.mxu1 %v1695_v38  ;;  %v1699_v41 = vld [vmem:[%s2486_s4 + $0x54] ss:$8 sps:$4 sm:$0xff]   ;;  %v1701_v42 = vld [vmem:[%s2486_s4 + $0x50] ss:$8 sps:$4 sm:$0xff]   ;;  %v1702_v43 = vld [vmem:[%s2486_s4 + $0x44] ss:$8 sps:$4 sm:$0xff]  }
   0xb   :  { %362 = vmatpush1.bf16.msra.mxu0 %v1677_v24  ;;  %608 = vmatprep.subr.bf16.mxu1 %v1696_v39  ;;  %v1704_v44 = vld [vmem:[%s2486_s4 + $0x40] ss:$8 sps:$4 sm:$0xff]   ;;  %v1705_v45 = vld [vmem:[%s2486_s4 + $0x34] ss:$8 sps:$4 sm:$0xff]   ;;  %v1707_v46 = vld [vmem:[%s2486_s4 + $0x30] ss:$8 sps:$4 sm:$0xff]  }
   0xc   :  { %58 = vbcast.lane.b32.xlu1 %v56_v7, 256  ;;  %363 = vmatprep.subr.bf16.mxu0 %v1678_v26  ;;  %v1708_v47 = vld [vmem:[%s2486_s4 + $0x24] ss:$8 sps:$4 sm:$0xff]   ;;  %v1710_v48 = vld [vmem:[%s2486_s4 + $0x20] ss:$8 sps:$4 sm:$0xff]   ;;  %vm264_vm4 = vcmask 1044484  }
   0xd   :  { %v1711_v49 = vld [vmem:[%s2486_s4 + $0x14] ss:$8 sps:$4 sm:$0xff]   ;;  %v1713_v50 = vld [vmem:[%s2486_s4 + $0x10] ss:$8 sps:$4 sm:$0xff]   ;;  %v1714_v51 = vld [vmem:[%s2486_s4 + $0x4] ss:$8 sps:$4 sm:$0xff]  }
   0xe   :  { %609 = vmatpush1.bf16.msra.mxu1 %v1698_v40  ;;  %v1716_v52 = vld [vmem:[%s2486_s4] ss:$8 sps:$4 sm:$0xff]   ;;  %v1717_v53 = vld [vmem:[%s2486_s4 + $0xf4] ss:$8 sps:$4 sm:$0xff]   ;;  %v1719_v54 = vld [vmem:[%s2486_s4 + $0xf0] ss:$8 sps:$4 sm:$0xff]  }
   0xf   :  { %364 = vmatpush1.bf16.msra.mxu0 %v1680_v27  ;;  %610 = vmatprep.subr.bf16.mxu1 %v1699_v41  ;;  %v1720_v55 = vld [vmem:[%s2486_s4 + $0xe4] ss:$8 sps:$4 sm:$0xff]   ;;  %v1722_v56 = vld [vmem:[%s2486_s4 + $0xe0] ss:$8 sps:$4 sm:$0xff]   ;;  %v1723_v57 = vld [vmem:[%s2486_s4 + $0xd4] ss:$8 sps:$4 sm:$0xff]  }
  0x10   :  { %79 = vbcast.lane.b32.xlu1 %v77_v9, 256  ;;  %365 = vmatprep.subr.bf16.mxu0 %v1681_v28  ;;  %v1725_v58 = vld [vmem:[%s2486_s4 + $0xd0] ss:$8 sps:$4 sm:$0xff]   ;;  %v1726_v59 = vld [vmem:[%s2486_s4 + $0xc4] ss:$8 sps:$4 sm:$0xff]   ;;  %vm267_vm5 = vcmask 1045509  }
  0x11   :  { %v1728_v60 = vld [vmem:[%s2486_s4 + $0xc0] ss:$8 sps:$4 sm:$0xff]   ;;  %v1729_v61 = vld [vmem:[%s2486_s4 + $0xb4] ss:$8 sps:$4 sm:$0xff]   ;;  %v1731_v62 = vld [vmem:[%s2486_s4 + $0xb0] ss:$8 sps:$4 sm:$0xff]  }
  0x12   :  { %611 = vmatpush1.bf16.msra.mxu1 %v1701_v42  ;;  %v1732_v63 = vld [vmem:[%s2486_s4 + $0xa4] ss:$8 sps:$4 sm:$0xff]   ;;  %v1734_v0 = vld [vmem:[%s2486_s4 + $0xa0] ss:$8 sps:$4 sm:$0xff]   ;;  %v1667_v27 = vld [vmem:[%s2487_s0 + $0x18] sm:$0xff]   ;;  %vm270_vm6 = vcmask 1046534  }
  0x13   :  { %366 = vmatpush1.bf16.msra.mxu0 %v1683_v29  ;;  %612 = vmatprep.subr.bf16.mxu1 %v1702_v43  ;;  %v1665_v1 = vld [vmem:[%s2487_s0 + $0x8] sm:$0xff]   ;;  %v1650_v6 = vld [vmem:[%s2487_s0] sm:$0xff]   ;;  %v1664_v39 = vunpack.c.h.bf16 %v1667_v27  ;;  %vm273_vm7 = vcmask 1047559  }
  0x14   :  { %86 = vbcast.lane.b32.xlu1 %v84_v11, 256  ;;  %367 = vmatprep.subr.bf16.mxu0 %v1684_v30  ;;  %v1655_v3 = vunpack.c.l.bf16 %v1665_v1  ;;  %v1651_v11 = vunpack.c.l.bf16 %v1650_v6  ;;  %v1656_v13 = vunpack.c.h.bf16 %v1665_v1  ;;  %v1652_v38 = vunpack.c.h.bf16 %v1650_v6 }
  0x16   :  { %613 = vmatpush1.bf16.msra.mxu1 %v1704_v44 }
  0x17   :  { %368 = vmatpush1.bf16.msra.mxu0 %v1686_v31  ;;  %614 = vmatprep.subr.bf16.mxu1 %v1705_v45 }
  0x18   :  { %93 = vbcast.lane.b32.xlu1 %v91_v16, 256  ;;  %369 = vmatprep.subr.bf16.mxu0 %v1687_v32  ;;  %v1666_v16 = vld [vmem:[%s2487_s0 + $0x10] sm:$0xff]  }
  0x19   :  { %65 = vbcast.lane.b32.xlu0 %v63_v18, 256  ;;  %v1659_v20 = vunpack.c.l.bf16 %v1666_v16  ;;  %v1660_v24 = vunpack.c.h.bf16 %v1666_v16 }
  0x1a   :  { %615 = vmatpush1.bf16.msra.mxu1 %v1707_v46 }
  0x1b   :  { %370 = vmatpush1.bf16.msra.mxu0 %v1689_v33  ;;  %616 = vmatprep.subr.bf16.mxu1 %v1708_v47  ;;  %v1663_v33 = vunpack.c.l.bf16 %v1667_v27 }
  0x1c   :  { %100 = vbcast.lane.b32.xlu1 %v98_v21, 256  ;;  %371 = vmatprep.subr.bf16.mxu0 %v1690_v34 }
  0x1e   :  { %617 = vmatpush1.bf16.msra.mxu1 %v1710_v48 }
  0x1f   :  { %372 = vmatpush1.bf16.msra.mxu0 %v1692_v36  ;;  %618 = vmatprep.subr.bf16.mxu1 %v1711_v49 }
  0x20   :  { %107 = vbcast.lane.b32.xlu1 %v105_v25, 256 }
  0x22   :  { %619 = vmatpush1.bf16.msra.mxu1 %v1713_v50 }
  0x23   :  { %620 = vmatprep.subr.bf16.mxu1 %v1714_v51 }
  0x26   :  { %621 = vmatpush1.bf16.msra.mxu1 %v1716_v52 }
  0x27   :  { %622 = vmatprep.subr.bf16.mxu1 %v1717_v53 }
  0x2a   :  { %623 = vmatpush2.bf16.msra.mxu1 %v1719_v54 }
  0x2b   :  { %624 = vmatprep.subr.bf16.mxu1 %v1720_v55 }
  0x2e   :  { %625 = vmatpush2.bf16.msra.mxu1 %v1722_v56 }
  0x2f   :  { %626 = vmatprep.subr.bf16.mxu1 %v1723_v57 }
  0x32   :  { %627 = vmatpush2.bf16.msra.mxu1 %v1725_v58 }
  0x33   :  { %628 = vmatprep.subr.bf16.mxu1 %v1726_v59 }
  0x36   :  { %629 = vmatpush2.bf16.msra.mxu1 %v1728_v60 }
  0x37   :  { %630 = vmatprep.subr.bf16.mxu1 %v1729_v61 }
  0x3a   :  { %631 = vmatpush2.bf16.msra.mxu1 %v1731_v62 }
  0x3b   :  { %632 = vmatprep.subr.bf16.mxu1 %v1732_v63 }
  0x3e   :  { %633 = vmatpush2.bf16.msra.mxu1 %v1734_v0 }
  0x7a   :  { %v73_v2 = vpop.permute.xlu1 %72 }
  0x7b   :  { %v111_v9 = vmul.f32 %v1655_v3, %v73_v2 }
  0x7d   :  { %v129_v17 = vrot.slane %v111_v9, 4 }
  0x7e   :  { %v59_v7 = vpop.permute.xlu1 %58 }
  0x7f   :  { %v109_v18 = vmul.f32 %v1651_v11, %v59_v7  ;;  %v130_v22 = vadd.f32 %v129_v17, %v111_v9 }
  0x81   :  { %v117_v23 = vrot.slane %v109_v18, 4  ;;  %v131_v29 = vrot.slane %v130_v22, 2 }
  0x82   :  { %v80_v15 = vpop.permute.xlu1 %79 }
  0x83   :  { %v112_v19 = vmul.f32 %v1656_v13, %v80_v15  ;;  %v118_v30 = vadd.f32 %v117_v23, %v109_v18  ;;  %v132_v40 = vadd.f32 %v131_v29, %v130_v22 }
  0x85   :  { %v135_v25 = vrot.slane %v112_v19, 4  ;;  %v119_v41 = vrot.slane %v118_v30, 2  ;;  %v133_v11 = vrot.slane %v132_v40, 1 }
  0x86   :  { %v87_v21 = vpop.permute.xlu1 %86 }
  0x87   :  { %v113_v26 = vmul.f32 %v1659_v20, %v87_v21  ;;  %v136_v34 = vadd.f32 %v135_v25, %v112_v19  ;;  %v120_v55 = vadd.f32 %v119_v41, %v118_v30 }
  0x89   :  { %v141_v35 = vrot.slane %v113_v26, 4  ;;  %v137_v48 = vrot.slane %v136_v34, 2  ;;  %v121_v15 = vrot.slane %v120_v55, 1 }
  0x8a   :  { %v94_v28 = vpop.permute.xlu1 %93 }
  0x8b   :  { %v114_v31 = vmul.f32 %v1660_v24, %v94_v28  ;;  %v142_v49 = vadd.f32 %v141_v35, %v113_v26  ;;  %v138_v61 = vadd.f32 %v137_v48, %v136_v34  ;;  %v134_v24 = vadd.f32 %v133_v11, %v132_v40 }
  0x8c   :  { %v168_v32 = vpop.xlane.xlu0 %167  ;;  %v122_v27 = vadd.f32 %v121_v15, %v120_v55 }
  0x8d   :  { %v169_v36 = vadd.f32 1e-10, %v168_v32  ;;  %v147_v42 = vrot.slane %v114_v31, 4  ;;  %v143_v0 = vrot.slane %v142_v49, 2  ;;  %v139_v16 = vrot.slane %v138_v61, 1 }
  0x8e   :  { %v101_v37 = vpop.permute.xlu1 %100 }
  0x8f   :  { %v172_v43 = vrot.slane %v169_v36, 2  ;;  %v173_v44 = vrot.slane %v169_v36, 3  ;;  %1885 = vrcp.f32 %v169_v36  ;;  %v176_v45 = vrot.slane %v169_v36, 6 }
  0x90   :  { %v115_v46 = vmul.f32 %v1663_v33, %v101_v37  ;;  %v66_v47 = vpop.permute.xlu0 %65  ;;  %v171_v50 = vrot.slane %v169_v36, 1  ;;  %v177_v53 = vrot.slane %v169_v36, 7  ;;  %v148_v56 = vadd.f32 %v147_v42, %v114_v31 }
  0x91   :  { %1887 = vrcp.f32 %v172_v43  ;;  %v110_v52 = vmul.f32 %v1652_v38, %v66_v47  ;;  %v174_v60 = vrot.slane %v169_v36, 4  ;;  %v175_v63 = vrot.slane %v169_v36, 5 }
  0x92   :  { %1889 = vrcp.f32 %v173_v44  ;;  %v153_v51 = vrot.slane %v115_v46, 4  ;;  %v108_v54 = vpop.permute.xlu1 %107  ;;  %v149_v3 = vrot.slane %v148_v56, 2  ;;  %v144_v17 = vadd.f32 %v143_v0, %v142_v49 }
  0x93   :  { %1891 = vrcp.f32 %v176_v45  ;;  %v116_v57 = vmul.f32 %v1664_v39, %v108_v54  ;;  %v123_v59 = vrot.slane %v110_v52, 4  ;;  %v140_v28 = vadd.f32 %v139_v16, %v138_v61 }
  0x94   :  { %v154_v58 = vadd.f32 %v153_v51, %v115_v46  ;;  %1893 = vrcp.f32 %v171_v50  ;;  %v150_v19 = vadd.f32 %v149_v3, %v148_v56  ;;  %v145_v29 = vrot.slane %v144_v17, 1 }
  0x95   :  { %1895 = vrcp.f32 %v177_v53  ;;  %v159_v62 = vrot.slane %v116_v57, 4  ;;  %v124_v2 = vadd.f32 %v123_v59, %v110_v52 }
  0x96   :  { %v155_v1 = vrot.slane %v154_v58, 2  ;;  %1897 = vrcp.f32 %v174_v60  ;;  %v151_v32 = vrot.slane %v150_v19, 1  ;;  %v146_v44 = vadd.f32 %v145_v29, %v144_v17  ;;  %v1746_v29 = vld [vmem:[%s2488_s6 + $0x15c] ss:$24 sps:$4 sm:$0xff]  }
  0x97   :  { %v160_v6 = vadd.f32 %v159_v62, %v116_v57  ;;  %1899 = vrcp.f32 %v175_v63  ;;  %v125_v9 = vrot.slane %v124_v2, 2 }
  0x98   :  { %v156_v7 = vadd.f32 %v155_v1, %v154_v58  ;;  %v152_v47 = vadd.f32 %v151_v32, %v150_v19  ;;  %v1755_v32 = vld [vmem:[%s2488_s6 + $0xf4] ss:$24 sps:$4 sm:$0xff]  }
  0x99   :  { %v161_v13 = vrot.slane %v160_v6, 2  ;;  %v126_v18 = vadd.f32 %v125_v9, %v124_v2 }
  0x9a   :  { %v157_v20 = vrot.slane %v156_v7, 1 }
  0x9b   :  { %v162_v21 = vadd.f32 %v161_v13, %v160_v6  ;;  %v127_v22 = vrot.slane %v126_v18, 1 }
  0x9c   :  { %v1886_v23 = vpop.eup %1885  ;;  %v158_v33 = vadd.f32 %v157_v20, %v156_v7 }
  0x9d   :  { %v163_v25 = vrot.slane %v162_v21, 1  ;;  %v128_v30 = vadd.f32 %v127_v22, %v126_v18  ;;  %v187_v37 = vmul.f32 %v1886_v23, %v122_v27  ;;  %v1735_v23 = vld [vmem:[%s2486_s4 + $0x94] ss:$8 sps:$4 sm:$0xff]   ;;  %v1741_v27 = vld [vmem:[%s2488_s6 + $0x150] ss:$24 sps:$4 sm:$0xff]  }
  0x9e   :  { %v1888_v26 = vpop.eup %1887  ;;  %634 = vmatprep.subr.bf16.mxu1 %v1735_v23  ;;  %v1780_v23 = vld [vmem:[%s2488_s6 + $0x38] ss:$24 sps:$4 sm:$0xff]  }
  0x9f   :  { %v1890_v31 = vpop.eup %1889  ;;  %v164_v34 = vadd.f32 %v163_v25, %v162_v21  ;;  %v191_v35 = vmul.f32 %v1888_v26, %v134_v24  ;;  %v202_v51 = vpack.c.bf16 %v187_v37, %v187_v37  ;;  %v1737_v24 = vld [vmem:[%s2486_s4 + $0x90] ss:$8 sps:$4 sm:$0xff]   ;;  %v1738_v25 = vld [vmem:[%s2486_s4 + $0x84] ss:$8 sps:$4 sm:$0xff]   ;;  %v1740_v26 = vld [vmem:[%s2486_s4 + $0x80] ss:$8 sps:$4 sm:$0xff]  }
  0xa0   :  { %v1892_v36 = vpop.eup %1891  ;;  %v193_v38 = vmul.f32 %v1890_v31, %v140_v28  ;;  %635 = vmatpush2.bf16.msra.mxu1 %v1737_v24  ;;  %v1743_v28 = vld [vmem:[%s2488_s6 + $0x154] ss:$24 sps:$4 sm:$0xff]   ;;  %v1747_v31 = vld [vmem:[%s2488_s6 + $0x120] ss:$24 sps:$4 sm:$0xff]   ;;  %v1765_v37 = vld [vmem:[%s2488_s6 + $0x90] ss:$24 sps:$4 sm:$0xff]  }
  0xa1   :  { %v1894_v39 = vpop.eup %1893  ;;  %v199_v41 = vmul.f32 %v1892_v36, %v158_v33  ;;  %v204_v42 = vpack.c.bf16 %v191_v35, %v191_v35  ;;  %v246_v62 = vunpack.c.l.b16 %v202_v51  ;;  %636 = vmatprep.subr.bf16.mxu1 %v1738_v25  ;;  %1259 = vmatprep.subr.bf16.mxu0 %v1743_v28  ;;  %v1753_v33 = vld [vmem:[%s2488_s6 + $0xf0] ss:$24 sps:$4 sm:$0xff]   ;;  %v1759_v35 = vld [vmem:[%s2488_s6 + $0xc0] ss:$24 sps:$4 sm:$0xff]   ;;  %v1767_v36 = vld [vmem:[%s2488_s6 + $0x94] ss:$24 sps:$4 sm:$0xff]  }
  0xa2   :  { %v1896_v43 = vpop.eup %1895  ;;  %v189_v40 = vmul.f32 %v1894_v39, %v128_v30  ;;  %v205_v45 = vpack.c.bf16 %v193_v38, %v193_v38  ;;  %v1749_v30 = vld [vmem:[%s2488_s6 + $0x124] ss:$24 sps:$4 sm:$0xff]   ;;  %v1771_v39 = vld [vmem:[%s2488_s6 + $0x60] ss:$24 sps:$4 sm:$0xff]  }
  0xa3   :  { %v1898_v46 = vpop.eup %1897  ;;  %v201_v48 = vmul.f32 %v1896_v43, %v164_v34  ;;  %v248_v49 = vunpack.c.l.b16 %v204_v42  ;;  %v208_v54 = vpack.c.bf16 %v199_v41, %v199_v41  ;;  %v1761_v34 = vld [vmem:[%s2488_s6 + $0xc4] ss:$24 sps:$4 sm:$0xff]   ;;  %v1779_v41 = vld [vmem:[%s2488_s6 + $0x34] ss:$24 sps:$4 sm:$0xff]   ;;  %v1777_v42 = vld [vmem:[%s2488_s6 + $0x30] ss:$24 sps:$4 sm:$0xff]  }
  0xa4   :  { %v1900_v50 = vpop.eup %1899  ;;  %v203_v52 = vpack.c.bf16 %v189_v40, %v189_v40  ;;  %v195_v53 = vmul.f32 %v1898_v46, %v146_v44  ;;  %v249_v59 = vunpack.c.l.b16 %v205_v45  ;;  %637 = vmatpush2.bf16.msra.mxu1 %v1740_v26  ;;  %v1773_v38 = vld [vmem:[%s2488_s6 + $0x64] ss:$24 sps:$4 sm:$0xff]   ;;  %v1783_v44 = vld [vmem:[%s2488_s6] ss:$24 sps:$4 sm:$0xff]   ;;  %v1791_v40 = vld [vmem:[%s2488_s6 + $0x2d4] ss:$24 sps:$4 sm:$0xff]  }
  0xa5   :  { %v197_v55 = vmul.f32 %v1900_v50, %v152_v47  ;;  %v209_v57 = vpack.c.bf16 %v201_v48, %v201_v48  ;;  %v257_v61 = vrot.slane %v248_v49, 6  ;;  %v252_v1 = vunpack.c.l.b16 %v208_v54  ;;  %1300 = vmatprep.subr.bf16.mxu1 %v1746_v29  ;;  %v1785_v43 = vld [vmem:[%s2488_s6 + $0x4] ss:$24 sps:$4 sm:$0xff]   ;;  %v1789_v45 = vld [vmem:[%s2488_s6 + $0x2d0] ss:$24 sps:$4 sm:$0xff]  }
  0xa6   :  { %v247_v56 = vunpack.c.l.b16 %v203_v52  ;;  %v206_v58 = vpack.c.bf16 %v195_v53, %v195_v53  ;;  %v260_v7 = vrot.slane %v249_v59, 5  ;;  %v1797_v46 = vld [vmem:[%s2488_s6 + $0x2a4] ss:$24 sps:$4 sm:$0xff]   ;;  %v1795_v47 = vld [vmem:[%s2488_s6 + $0x2a0] ss:$24 sps:$4 sm:$0xff]  }
  0xa7   :  { %v207_v60 = vpack.c.bf16 %v197_v55, %v197_v55  ;;  %v253_v6 = vunpack.c.l.b16 %v209_v57  ;;  %v269_v16 = vrot.slane %v252_v1, 2  ;;  %v1803_v48 = vld [vmem:[%s2488_s6 + $0x274] ss:$24 sps:$4 sm:$0xff]   ;;  %v1801_v49 = vld [vmem:[%s2488_s6 + $0x270] ss:$24 sps:$4 sm:$0xff]  }
  0xa8   :  { %v254_v63 = vrot.slane %v247_v56, 7  ;;  %v250_v0 = vunpack.c.l.b16 %v206_v58  ;;  %v1809_v50 = vld [vmem:[%s2488_s6 + $0x244] ss:$24 sps:$4 sm:$0xff]   ;;  %v1807_v51 = vld [vmem:[%s2488_s6 + $0x240] ss:$24 sps:$4 sm:$0xff]  }
  0xa9   :  { %v251_v2 = vunpack.c.l.b16 %v207_v60  ;;  %v272_v19 = vrot.slane %v253_v6, 1  ;;  %v1815_v52 = vld [vmem:[%s2488_s6 + $0x214] ss:$24 sps:$4 sm:$0xff]   ;;  %v1813_v53 = vld [vmem:[%s2488_s6 + $0x210] ss:$24 sps:$4 sm:$0xff]  }
  0xaa   :  { %v256_v3 = vsel %vm255_vm1, %v254_v63, %v246_v62  ;;  %v263_v11 = vrot.slane %v250_v0, 4  ;;  %v1821_v54 = vld [vmem:[%s2488_s6 + $0x1e4] ss:$24 sps:$4 sm:$0xff]   ;;  %v1819_v55 = vld [vmem:[%s2488_s6 + $0x1e0] ss:$24 sps:$4 sm:$0xff]  }
  0xab   :  { %v259_v9 = vsel %vm258_vm2, %v257_v61, %v256_v3  ;;  %v266_v15 = vrot.slane %v251_v2, 3  ;;  %v226_v56 = vld [vmem:[%s2489_s3] sm:$0x3]  ;;  %v1744_v6 = vld [vmem:[%s2488_s6 + $0x158] ss:$24 sps:$4 sm:$0xff]  }
  0xac   :  { %v262_v13 = vsel %vm261_vm3, %v260_v7, %v259_v9  ;;  %v231_v57 = vrot.slane %v226_v56, %v1964_v5  ;;  %v235_v58 = vrot.slane %v226_v56, %v1979_v14  ;;  %v1752_v9 = vld [vmem:[%s2488_s6 + $0x12c] ss:$24 sps:$4 sm:$0xff]   ;;  %v1786_v25 = vld [vmem:[%s2488_s6 + $0x8] ss:$24 sps:$4 sm:$0xff]   ;;  %v1794_v26 = vld [vmem:[%s2488_s6 + $0x2dc] ss:$24 sps:$4 sm:$0xff]  }
  0xad   :  { %v265_v17 = vsel %vm264_vm4, %v263_v11, %v262_v13  ;;  %v1750_v11 = vld [vmem:[%s2488_s6 + $0x128] ss:$24 sps:$4 sm:$0xff]   ;;  %v1758_v13 = vld [vmem:[%s2488_s6 + $0xfc] ss:$24 sps:$4 sm:$0xff]   ;;  %v1788_v24 = vld [vmem:[%s2488_s6 + $0xc] ss:$24 sps:$4 sm:$0xff]  }
  0xae   :  { %v268_v18 = vsel %vm267_vm5, %v266_v15, %v265_v17  ;;  %v1756_v15 = vld [vmem:[%s2488_s6 + $0xf8] ss:$24 sps:$4 sm:$0xff]   ;;  %v1762_v17 = vld [vmem:[%s2488_s6 + $0xc8] ss:$24 sps:$4 sm:$0xff]   ;;  %v1800_v28 = vld [vmem:[%s2488_s6 + $0x2ac] ss:$24 sps:$4 sm:$0xff]  }
  0xaf   :  { %v271_v20 = vsel %vm270_vm6, %v269_v16, %v268_v18  ;;  %v1764_v16 = vld [vmem:[%s2488_s6 + $0xcc] ss:$24 sps:$4 sm:$0xff]   ;;  %v1770_v18 = vld [vmem:[%s2488_s6 + $0x9c] ss:$24 sps:$4 sm:$0xff]   ;;  %v1798_v29 = vld [vmem:[%s2488_s6 + $0x2a8] ss:$24 sps:$4 sm:$0xff]  }
  0xb0   :  { %v274_v21 = vsel %vm273_vm7, %v272_v19, %v271_v20  ;;  %v1768_v19 = vld [vmem:[%s2488_s6 + $0x98] ss:$24 sps:$4 sm:$0xff]   ;;  %v1776_v20 = vld [vmem:[%s2488_s6 + $0x6c] ss:$24 sps:$4 sm:$0xff]  }
  0xb1   :  { %v275_v22 = vpack.c.b16 %v274_v21, %v274_v21  ;;  %v1774_v21 = vld [vmem:[%s2488_s6 + $0x68] ss:$24 sps:$4 sm:$0xff]  }
  0xb3   :  { %390 = vmatmul.mubr.bf16.vlgmr.msra.gmra.mxu0 %v275_v22  ;;  %v1782_v22 = vld [vmem:[%s2488_s6 + $0x3c] ss:$24 sps:$4 sm:$0xff]  }
  0xb4   :  { %1260 = vmatpush1.bf16.msra.mxu0 %v1741_v27  ;;  %v1792_v27 = vld [vmem:[%s2488_s6 + $0x2d8] ss:$24 sps:$4 sm:$0xff]  }
  0xb5   :  { %1261 = vmatprep.subr.bf16.mxu0 %v1749_v30  ;;  %v1806_v30 = vld [vmem:[%s2488_s6 + $0x27c] ss:$24 sps:$4 sm:$0xff]  }
  0xb8   :  { %1262 = vmatpush1.bf16.msra.mxu0 %v1747_v31  ;;  %v1804_v31 = vld [vmem:[%s2488_s6 + $0x278] ss:$24 sps:$4 sm:$0xff]  }
  0xb9   :  { %1263 = vmatprep.subr.bf16.mxu0 %v1755_v32  ;;  %v1812_v32 = vld [vmem:[%s2488_s6 + $0x24c] ss:$24 sps:$4 sm:$0xff]  }
  0xbc   :  { %1264 = vmatpush1.bf16.msra.mxu0 %v1753_v33  ;;  %v1810_v33 = vld [vmem:[%s2488_s6 + $0x248] ss:$24 sps:$4 sm:$0xff]  }
  0xbd   :  { %1265 = vmatprep.subr.bf16.mxu0 %v1761_v34  ;;  %v1818_v34 = vld [vmem:[%s2488_s6 + $0x21c] ss:$24 sps:$4 sm:$0xff]  }
  0xc0   :  { %1266 = vmatpush1.bf16.msra.mxu0 %v1759_v35  ;;  %v1816_v35 = vld [vmem:[%s2488_s6 + $0x218] ss:$24 sps:$4 sm:$0xff]  }
  0xc1   :  { %1267 = vmatprep.subr.bf16.mxu0 %v1767_v36  ;;  %v1824_v36 = vld [vmem:[%s2488_s6 + $0x1ec] ss:$24 sps:$4 sm:$0xff]  }
  0xc4   :  { %1268 = vmatpush1.bf16.msra.mxu0 %v1765_v37  ;;  %v1822_v37 = vld [vmem:[%s2488_s6 + $0x1e8] ss:$24 sps:$4 sm:$0xff]  }
  0xc5   :  { %1269 = vmatprep.subr.bf16.mxu0 %v1773_v38  ;;  %v1827_v38 = vld [vmem:[%s2488_s6 + $0x1b4] ss:$24 sps:$4 sm:$0xff]  }
  0xc8   :  { %1270 = vmatpush1.bf16.msra.mxu0 %v1771_v39  ;;  %v1825_v39 = vld [vmem:[%s2488_s6 + $0x1b0] ss:$24 sps:$4 sm:$0xff]  }
  0xc9   :  { %1271 = vmatprep.subr.bf16.mxu0 %v1779_v41  ;;  %v1830_v41 = vld [vmem:[%s2488_s6 + $0x1bc] ss:$24 sps:$4 sm:$0xff]  }
  0xcc   :  { %1272 = vmatpush1.bf16.msra.mxu0 %v1777_v42  ;;  %v1828_v42 = vld [vmem:[%s2488_s6 + $0x1b8] ss:$24 sps:$4 sm:$0xff]  }
  0xcd   :  { %1273 = vmatprep.subr.bf16.mxu0 %v1785_v43  ;;  %v1833_v43 = vld [vmem:[%s2488_s6 + $0x184] ss:$24 sps:$4 sm:$0xff]  }
  0xd0   :  { %1274 = vmatpush1.bf16.msra.mxu0 %v1783_v44  ;;  %v1831_v44 = vld [vmem:[%s2488_s6 + $0x180] ss:$24 sps:$4 sm:$0xff]  }
  0xd1   :  { %1275 = vmatprep.subr.bf16.mxu0 %v1791_v40  ;;  %v1834_v40 = vld [vmem:[%s2488_s6 + $0x188] ss:$24 sps:$4 sm:$0xff]  }
  0xd4   :  { %1276 = vmatpush2.bf16.msra.mxu0 %v1789_v45  ;;  %v1836_v45 = vld [vmem:[%s2488_s6 + $0x18c] ss:$24 sps:$4 sm:$0xff]  }
  0xd5   :  { %1277 = vmatprep.subr.bf16.mxu0 %v1797_v46  ;;  %v1839_v46 = vld [vmem:[%s2488_s6 + $0x164] ss:$24 sps:$4 sm:$0xff]  }
  0xd8   :  { %1278 = vmatpush2.bf16.msra.mxu0 %v1795_v47  ;;  %v434_v47 = vld [vmem:[%s2490_s5] sm:$0x3] }
  0xd9   :  { %1279 = vmatprep.subr.bf16.mxu0 %v1803_v48  ;;  %v439_v48 = vrot.slane %v434_v47, %v1964_v5 }
  0xdc   :  { %1280 = vmatpush2.bf16.msra.mxu0 %v1801_v49  ;;  %v443_v49 = vrot.slane %v434_v47, %v1979_v14 }
  0xdd   :  { %1281 = vmatprep.subr.bf16.mxu0 %v1809_v50 }
  0xe0   :  { %1282 = vmatpush2.bf16.msra.mxu0 %v1807_v51 }
  0xe1   :  { %1283 = vmatprep.subr.bf16.mxu0 %v1815_v52 }
  0xe4   :  { %1284 = vmatpush2.bf16.msra.mxu0 %v1813_v53 }
  0xe5   :  { %1285 = vmatprep.subr.bf16.mxu0 %v1821_v54 }
  0xe8   :  { %1286 = vmatpush2.bf16.msra.mxu0 %v1819_v55 }
  0xe9   :  { %1287 = vmatprep.subr.bf16.mxu0 %v1827_v38 }
  0xec   :  { %1288 = vmatpush2.bf16.msra.mxu0 %v1825_v39 }
  0xed   :  { %1289 = vmatprep.subr.bf16.mxu0 %v1833_v43 }
  0xf0   :  { %1290 = vmatpush2.bf16.msra.mxu0 %v1831_v44 }
  0xf1   :  { %1341 = vmatprep.subr.bf16.mxu0 %v1839_v46 }
 0x173   :  { %v391_v59 = vpop.f32.mrf.mxu0 }
 0x174   :  { %v392_v60 = vadd.f32 %v391_v59, %v231_v57  ;;  %v1837_v59 = vld [vmem:[%s2488_s6 + $0x160] ss:$24 sps:$4 sm:$0xff]  }
 0x175   :  { %v393_v61 = vpop.f32.mrf.mxu0 }
 0x176   :  { %v394_v62 = vadd.f32 %v393_v61, %v235_v58  ;;  %v398_v63 = vmax.f32 %v392_v60, 0.0  ;;  %v1842_v61 = vld [vmem:[%s2488_s6 + $0x134] ss:$24 sps:$4 sm:$0xff]  }
 0x177   :  { %v395_v0 = vpop.f32.mrf.mxu0 }
 0x178   :  { %v399_v1 = vmax.f32 %v394_v62, 0.0  ;;  %v400_v7 = vpack.c.bf16 %v398_v63, %v398_v63  ;;  %v1840_v62 = vld [vmem:[%s2488_s6 + $0x130] ss:$24 sps:$4 sm:$0xff]   ;;  %v1845_v63 = vld [vmem:[%s2488_s6 + $0x104] ss:$24 sps:$4 sm:$0xff]  }
 0x179   :  { %v396_v2 = vpop.f32.mrf.mxu0  ;;  %v1843_v0 = vld [vmem:[%s2488_s6 + $0x100] ss:$24 sps:$4 sm:$0xff]  }
 0x17a   :  { %v401_v3 = vpack.c.bf16 %v399_v1, %v399_v1  ;;  %v1848_v1 = vld [vmem:[%s2488_s6 + $0xd4] ss:$24 sps:$4 sm:$0xff]   ;;  %v1846_v2 = vld [vmem:[%s2488_s6 + $0xd0] ss:$24 sps:$4 sm:$0xff]  }
 0x17c   :  { %638 = vmatprep.mubr.bf16.mxu1 %v401_v3  ;;  %v1851_v3 = vld [vmem:[%s2488_s6 + $0xa4] ss:$24 sps:$4 sm:$0xff]  }
 0x17d   :  { %639 = vmatmul.mubr.bf16.vlgmr.msra.gmra.mxu1 %v400_v7  ;;  %v1854_v7 = vld [vmem:[%s2488_s6 + $0x74] ss:$24 sps:$4 sm:$0xff]  }
 0x17e   :  { %1301 = vmatpush1.bf16.msra.mxu1 %v1744_v6  ;;  %v1849_v6 = vld [vmem:[%s2488_s6 + $0xa0] ss:$24 sps:$4 sm:$0xff]  }
 0x17f   :  { %1302 = vmatprep.subr.bf16.mxu1 %v1752_v9  ;;  %v1852_v9 = vld [vmem:[%s2488_s6 + $0x70] ss:$24 sps:$4 sm:$0xff]  }
 0x182   :  { %1303 = vmatpush1.bf16.msra.mxu1 %v1750_v11  ;;  %v1857_v11 = vld [vmem:[%s2488_s6 + $0x44] ss:$24 sps:$4 sm:$0xff]  }
 0x183   :  { %1304 = vmatprep.subr.bf16.mxu1 %v1758_v13  ;;  %v1855_v13 = vld [vmem:[%s2488_s6 + $0x40] ss:$24 sps:$4 sm:$0xff]  }
 0x186   :  { %1305 = vmatpush1.bf16.msra.mxu1 %v1756_v15  ;;  %v1860_v15 = vld [vmem:[%s2488_s6 + $0x14] ss:$24 sps:$4 sm:$0xff]  }
 0x187   :  { %1306 = vmatprep.subr.bf16.mxu1 %v1764_v16  ;;  %v1858_v16 = vld [vmem:[%s2488_s6 + $0x10] ss:$24 sps:$4 sm:$0xff]  }
 0x18a   :  { %1307 = vmatpush1.bf16.msra.mxu1 %v1762_v17  ;;  %v1863_v17 = vld [vmem:[%s2488_s6 + $0x2e4] ss:$24 sps:$4 sm:$0xff]  }
 0x18b   :  { %1308 = vmatprep.subr.bf16.mxu1 %v1770_v18  ;;  %v1861_v18 = vld [vmem:[%s2488_s6 + $0x2e0] ss:$24 sps:$4 sm:$0xff]  }
 0x18e   :  { %1309 = vmatpush1.bf16.msra.mxu1 %v1768_v19  ;;  %v1866_v19 = vld [vmem:[%s2488_s6 + $0x2b4] ss:$24 sps:$4 sm:$0xff]  }
 0x18f   :  { %1310 = vmatprep.subr.bf16.mxu1 %v1776_v20  ;;  %v1864_v20 = vld [vmem:[%s2488_s6 + $0x2b0] ss:$24 sps:$4 sm:$0xff]  }
 0x192   :  { %1311 = vmatpush1.bf16.msra.mxu1 %v1774_v21  ;;  %v1869_v21 = vld [vmem:[%s2488_s6 + $0x284] ss:$24 sps:$4 sm:$0xff]  }
 0x193   :  { %1312 = vmatprep.subr.bf16.mxu1 %v1782_v22  ;;  %v1867_v22 = vld [vmem:[%s2488_s6 + $0x280] ss:$24 sps:$4 sm:$0xff]  }
 0x196   :  { %1313 = vmatpush1.bf16.msra.mxu1 %v1780_v23  ;;  %v1872_v23 = vld [vmem:[%s2488_s6 + $0x254] ss:$24 sps:$4 sm:$0xff]  }
 0x197   :  { %1314 = vmatprep.subr.bf16.mxu1 %v1788_v24  ;;  %v1870_v24 = vld [vmem:[%s2488_s6 + $0x250] ss:$24 sps:$4 sm:$0xff]  }
 0x19a   :  { %1315 = vmatpush1.bf16.msra.mxu1 %v1786_v25  ;;  %v1875_v25 = vld [vmem:[%s2488_s6 + $0x224] ss:$24 sps:$4 sm:$0xff]  }
 0x19b   :  { %1316 = vmatprep.subr.bf16.mxu1 %v1794_v26  ;;  %v1873_v26 = vld [vmem:[%s2488_s6 + $0x220] ss:$24 sps:$4 sm:$0xff]  }
 0x19e   :  { %1317 = vmatpush2.bf16.msra.mxu1 %v1792_v27  ;;  %v1878_v27 = vld [vmem:[%s2488_s6 + $0x1f4] ss:$24 sps:$4 sm:$0xff]  }
 0x19f   :  { %1318 = vmatprep.subr.bf16.mxu1 %v1800_v28  ;;  %v1876_v28 = vld [vmem:[%s2488_s6 + $0x1f0] ss:$24 sps:$4 sm:$0xff]  }
 0x1a2   :  { %1319 = vmatpush2.bf16.msra.mxu1 %v1798_v29  ;;  %v1881_v29 = vld [vmem:[%s2488_s6 + $0x1c4] ss:$24 sps:$4 sm:$0xff]  }
 0x1a3   :  { %1320 = vmatprep.subr.bf16.mxu1 %v1806_v30  ;;  %v1879_v30 = vld [vmem:[%s2488_s6 + $0x1c0] ss:$24 sps:$4 sm:$0xff]  }
 0x1a6   :  { %1321 = vmatpush2.bf16.msra.mxu1 %v1804_v31  ;;  %v1884_v31 = vld [vmem:[%s2488_s6 + $0x194] ss:$24 sps:$4 sm:$0xff]  }
 0x1a7   :  { %1322 = vmatprep.subr.bf16.mxu1 %v1812_v32  ;;  %v1882_v32 = vld [vmem:[%s2488_s6 + $0x190] ss:$24 sps:$4 sm:$0xff]  }
 0x1aa   :  { %1323 = vmatpush2.bf16.msra.mxu1 %v1810_v33 }
 0x1ab   :  { %1324 = vmatprep.subr.bf16.mxu1 %v1818_v34 }
 0x1ae   :  { %1325 = vmatpush2.bf16.msra.mxu1 %v1816_v35 }
 0x1af   :  { %1326 = vmatprep.subr.bf16.mxu1 %v1824_v36 }
 0x1b2   :  { %1327 = vmatpush2.bf16.msra.mxu1 %v1822_v37 }
 0x1b3   :  { %1328 = vmatprep.subr.bf16.mxu1 %v1830_v41 }
 0x1b6   :  { %1329 = vmatpush2.bf16.msra.mxu1 %v1828_v42  ;;  %v747_v42 = vld [vmem:[%s2491_s7] sm:$0x3f] }
 0x1b7   :  { %1330 = vmatprep.subr.bf16.mxu1 %v1836_v45  ;;  %v756_v43 = vrot.slane %v747_v42, %v1979_v14  ;;  %v752_v44 = vrot.slane %v747_v42, %v1964_v5  ;;  %v760_v46 = vrot.slane %v747_v42, %v1962_v4 }
 0x1ba   :  { %1331 = vmatpush2.bf16.msra.mxu1 %v1834_v40 }
 0x23d   :  { %v640_v50 = vpop.f32.mrf.mxu1 }
 0x23e   :  { %v641_v51 = vadd.f32 %v640_v50, %v439_v48 }
 0x23f   :  { %v642_v52 = vpop.f32.mrf.mxu1 }
 0x240   :  { %v643_v53 = vadd.f32 %v642_v52, %v443_v49  ;;  %v647_v54 = vmax.f32 %v641_v51, 0.0  ;;  %v764_v49 = vrot.slane %v747_v42, %v1968_v8  ;;  %v768_v51 = vrot.slane %v747_v42, %v1971_v10 }
 0x241   :  { %v644_v55 = vpop.f32.mrf.mxu1 }
 0x242   :  { %v648_v56 = vmax.f32 %v643_v53, 0.0  ;;  %v2344_v60 = vpack.c.bf16 %v647_v54, %v647_v54  ;;  %v772_v53 = vrot.slane %v747_v42, %v1974_v12 }
 0x243   :  { %v645_v57 = vpop.f32.mrf.mxu1 }
 0x244   :  { %v650_v58 = vpack.c.bf16 %v648_v56, %v648_v56 }
 0x246   :  { %1291 = vmatprep.mubr.bf16.mxu0 %v650_v58  ;;  %1332 = vmatprep.mubr.bf16.mxu1 %v650_v58 }
 0x247   :  { %1292 = vmatmul.mubr.bf16.vlgmr.msra.gmra.mxu0 %v2344_v60  ;;  %1333 = vmatmul.mubr.bf16.vlgmr.msra.gmra.mxu1 %v2344_v60 }
 0x248   :  { %1342 = vmatpush1.bf16.msra.mxu0 %v1837_v59  ;;  %1373 = vmatprep.mubr.bf16.mxu0 %v650_v58 }
 0x249   :  { %1343 = vmatprep.subr.bf16.mxu0 %v1842_v61 }
 0x24c   :  { %1344 = vmatpush1.bf16.msra.mxu0 %v1840_v62 }
 0x24d   :  { %1345 = vmatprep.subr.bf16.mxu0 %v1845_v63 }
 0x250   :  { %1346 = vmatpush1.bf16.msra.mxu0 %v1843_v0 }
 0x251   :  { %1347 = vmatprep.subr.bf16.mxu0 %v1848_v1 }
 0x254   :  { %1348 = vmatpush1.bf16.msra.mxu0 %v1846_v2 }
 0x255   :  { %1349 = vmatprep.subr.bf16.mxu0 %v1851_v3 }
 0x258   :  { %1350 = vmatpush1.bf16.msra.mxu0 %v1849_v6 }
 0x259   :  { %1351 = vmatprep.subr.bf16.mxu0 %v1854_v7 }
 0x25c   :  { %1352 = vmatpush1.bf16.msra.mxu0 %v1852_v9 }
 0x25d   :  { %1353 = vmatprep.subr.bf16.mxu0 %v1857_v11 }
 0x260   :  { %1354 = vmatpush1.bf16.msra.mxu0 %v1855_v13 }
 0x261   :  { %1355 = vmatprep.subr.bf16.mxu0 %v1860_v15 }
 0x264   :  { %1356 = vmatpush1.bf16.msra.mxu0 %v1858_v16 }
 0x265   :  { %1357 = vmatprep.subr.bf16.mxu0 %v1863_v17 }
 0x268   :  { %1358 = vmatpush2.bf16.msra.mxu0 %v1861_v18 }
 0x269   :  { %1359 = vmatprep.subr.bf16.mxu0 %v1866_v19 }
 0x26c   :  { %1360 = vmatpush2.bf16.msra.mxu0 %v1864_v20 }
 0x26d   :  { %1361 = vmatprep.subr.bf16.mxu0 %v1869_v21 }
 0x270   :  { %1362 = vmatpush2.bf16.msra.mxu0 %v1867_v22 }
 0x271   :  { %1363 = vmatprep.subr.bf16.mxu0 %v1872_v23 }
 0x274   :  { %1364 = vmatpush2.bf16.msra.mxu0 %v1870_v24 }
 0x275   :  { %1365 = vmatprep.subr.bf16.mxu0 %v1875_v25 }
 0x278   :  { %1366 = vmatpush2.bf16.msra.mxu0 %v1873_v26 }
 0x279   :  { %1367 = vmatprep.subr.bf16.mxu0 %v1878_v27  ;;  %v1419_v27 = vld [vmem:[%s2492_s8] sm:$0x3f] }
 0x27c   :  { %1368 = vmatpush2.bf16.msra.mxu0 %v1876_v28  ;;  %v1457_v28 = vld [vmem:[%s2493_s9] sm:$0x3f] }
 0x27d   :  { %1369 = vmatprep.subr.bf16.mxu0 %v1881_v29  ;;  %v1432_v29 = vrot.slane %v1419_v27, %v1962_v4 }
 0x280   :  { %1370 = vmatpush2.bf16.msra.mxu0 %v1879_v30  ;;  %v1470_v30 = vrot.slane %v1457_v28, %v1962_v4 }
 0x281   :  { %1371 = vmatprep.subr.bf16.mxu0 %v1884_v31  ;;  %v1424_v31 = vrot.slane %v1419_v27, %v1964_v5 }
 0x284   :  { %1372 = vmatpush2.bf16.msra.mxu0 %v1882_v32  ;;  %v1462_v32 = vrot.slane %v1457_v28, %v1964_v5  ;;  %v1482_v5 = vrot.slane %v1457_v28, %v1974_v12 }
 0x287   :  { %1374 = vmatmul.mubr.bf16.vlgmr.msra.gmra.mxu0 %v2344_v60 }
 0x307   :  { %v1293_v33 = vpop.f32.mrf.mxu0  ;;  %v1334_v34 = vpop.f32.mrf.mxu1 }
 0x308   :  { %v1294_v45 = vadd.f32 %v1293_v33, %v752_v44  ;;  %v1335_v48 = vadd.f32 %v1334_v34, %v760_v46  ;;  %v1436_v33 = vrot.slane %v1419_v27, %v1968_v8  ;;  %v1428_v34 = vrot.slane %v1419_v27, %v1979_v14 }
 0x309   :  { %v1295_v35 = vpop.f32.mrf.mxu0  ;;  %v1336_v36 = vpop.f32.mrf.mxu1  ;;  %v1478_v44 = vrot.slane %v1457_v28, %v1971_v10 }
 0x30a   :  { %v1296_v40 = vadd.f32 %v1295_v35, %v756_v43  ;;  %v1337_v52 = vadd.f32 %v1336_v36, %v764_v49  ;;  %v1474_v36 = vrot.slane %v1457_v28, %v1968_v8 }
 0x30b   :  { %v1297_v37 = vpop.f32.mrf.mxu0  ;;  %v1338_v38 = vpop.f32.mrf.mxu1 }
 0x30c   :  { %v1382_v47 = vadd.f32 %v1296_v40, %v1294_v45  ;;  %v1440_v37 = vrot.slane %v1419_v27, %v1971_v10  ;;  %v1444_v38 = vrot.slane %v1419_v27, %v1974_v12 }
 0x30d   :  { %v1298_v39 = vpop.f32.mrf.mxu0  ;;  %v1339_v41 = vpop.f32.mrf.mxu1 }
 0x30e   :  { %v1383_v50 = vadd.f32 %v1382_v47, %v1335_v48  ;;  %v1466_v39 = vrot.slane %v1457_v28, %v1979_v14 }
 0x310   :  { %v1384_v55 = vadd.f32 %v1383_v50, %v1337_v52 }
 0x347   :  { %v1375_v54 = vpop.f32.mrf.mxu0 }
 0x348   :  { %v1376_v56 = vadd.f32 %v1375_v54, %v768_v51 }
 0x349   :  { %v1377_v57 = vpop.f32.mrf.mxu0 }
 0x34a   :  { %v1385_v58 = vadd.f32 %v1384_v55, %v1376_v56  ;;  %v1378_v59 = vadd.f32 %v1377_v57, %v772_v53 }
 0x34b   :  { %v1379_v60 = vpop.f32.mrf.mxu0 }
 0x34c   :  { %v1386_v61 = vadd.f32 %v1385_v58, %v1378_v59 }
 0x34d   :  { %v1380_v62 = vpop.f32.mrf.mxu0 }
 0x34e   :  { %1387 = vadd.xlane.f32.xlu0 %v1386_v61 }
 0x3d7   :  { %v1388_v63 = vpop.xlane.xlu0 %1387 }
 0x3d8   :  { %v1390_v0 = vmul.f32 0.0013020834, %v1388_v63 }
 0x3da   :  { %v1391_v1 = vsub.f32 %v1294_v45, %v1390_v0  ;;  %v1392_v2 = vsub.f32 %v1296_v40, %v1390_v0  ;;  %v1393_v3 = vsub.f32 %v1335_v48, %v1390_v0  ;;  %v1394_v6 = vsub.f32 %v1337_v52, %v1390_v0 }
 0x3db   :  { %v1395_v11 = vsub.f32 %v1376_v56, %v1390_v0  ;;  %v1396_v16 = vsub.f32 %v1378_v59, %v1390_v0 }
 0x3dc   :  { %v1397_v7 = vmul.f32 %v1391_v1, %v1391_v1  ;;  %v1398_v9 = vmul.f32 %v1392_v2, %v1392_v2  ;;  %v1399_v13 = vmul.f32 %v1393_v3, %v1393_v3  ;;  %v1400_v17 = vmul.f32 %v1394_v6, %v1394_v6 }
 0x3dd   :  { %v1401_v19 = vmul.f32 %v1395_v11, %v1395_v11  ;;  %v1402_v21 = vmul.f32 %v1396_v16, %v1396_v16 }
 0x3de   :  { %v1403_v15 = vadd.f32 %v1398_v9, %v1397_v7 }
 0x3e0   :  { %v1404_v18 = vadd.f32 %v1403_v15, %v1399_v13 }
 0x3e2   :  { %v1405_v20 = vadd.f32 %v1404_v18, %v1400_v17 }
 0x3e4   :  { %v1406_v22 = vadd.f32 %v1405_v20, %v1401_v19 }
 0x3e6   :  { %v1407_v23 = vadd.f32 %v1406_v22, %v1402_v21 }
 0x3e8   :  { %1408 = vadd.xlane.f32.xlu1 %v1407_v23 }
 0x471   :  { %v1409_v24 = vpop.xlane.xlu1 %1408 }
 0x472   :  { %v1410_v25 = vmul.f32 0.0013020834, %v1409_v24 }
 0x474   :  { %v1411_v26 = vadd.f32 1e-05, %v1410_v25 }
 0x476   :  { %1901 = vrsqrt.f32 %v1411_v26 }
 0x483   :  { %v1902_v35 = vpop.eup %1901 }
 0x484   :  { %v1413_v41 = vmul.f32 %v1902_v35, %v1391_v1  ;;  %v1414_v42 = vmul.f32 %v1902_v35, %v1392_v2  ;;  %v1415_v4 = vmul.f32 %v1902_v35, %v1393_v3  ;;  %v1416_v43 = vmul.f32 %v1902_v35, %v1394_v6 }
 0x485   :  { %v1417_v40 = vmul.f32 %v1902_v35, %v1395_v11  ;;  %v1418_v45 = vmul.f32 %v1902_v35, %v1396_v16 }
 0x486   :  { %v1451_v46 = vmul.f32 %v1424_v31, %v1413_v41  ;;  %v1452_v47 = vmul.f32 %v1428_v34, %v1414_v42  ;;  %v1453_v48 = vmul.f32 %v1432_v29, %v1415_v4  ;;  %v1454_v8 = vmul.f32 %v1436_v33, %v1416_v43 }
 0x487   :  { %v1455_v49 = vmul.f32 %v1440_v37, %v1417_v40  ;;  %v1456_v50 = vmul.f32 %v1444_v38, %v1418_v45 }
 0x488   :  { %v1489_v51 = vadd.f32 %v1462_v32, %v1451_v46  ;;  %v1490_v52 = vadd.f32 %v1466_v39, %v1452_v47  ;;  %v1491_v53 = vadd.f32 %v1470_v30, %v1453_v48  ;;  %v1492_v14 = vadd.f32 %v1474_v36, %v1454_v8 }
 0x489   :  { %v1493_v54 = vadd.f32 %v1478_v44, %v1455_v49  ;;  %v1494_v55 = vadd.f32 %v1482_v5, %v1456_v50 }
 0x48a   :  { %1495 = vst [vmem:[%s2494_s10] sm:$0xff] %v1489_v51  ;;  %1496 = vst [vmem:[%s2494_s10 + $0x8] sm:$0xff] %v1490_v52 }
 0x48b   :  { %1497 = vst [vmem:[%s2494_s10 + $0x10] sm:$0xff] %v1491_v53  ;;  %1498 = vst [vmem:[%s2494_s10 + $0x18] sm:$0xff] %v1492_v14 }
 0x48c   :  { %1499 = vst [vmem:[%s2494_s10 + $0x20] sm:$0xff] %v1493_v54  ;;  %1500 = vst [vmem:[%s2494_s10 + $0x28] sm:$0xff] %v1494_v55 }

</bundles_post_ra>
